<compile_context>
chip_gen: v6e
topology: v6e:2x2x1
jax: 0.10.0
libtpu: 0.0.40
codegen_flags: <defaults>
</compile_context>

<pallas_src>
from functools import partial

import numpy as np

import jax
import jax.numpy as jnp
from jax.experimental import pallas as pl
from jax.experimental.pallas import tpu as pltpu

KH, KW = 3, 3   # 3x3 conv, stride 1, padding 1 (standard ResNet-style block)
LANE = 128      # TPU lane width


# --------------------------------------------------------------------------
# Kernels
# --------------------------------------------------------------------------
def conv_bn_relu_kernel_im2col(x_ref, w_ref, shift_ref, o_ref, patch_ref):
    """One (batch, H-tile, Cout-tile) step; im2col patch cached across Cout tiles.

    x_ref:     (1, H+2, W+2, Cin)     padded NHWC input (bf16), whole image
    w_ref:     (KH*KW*Cin, TC)        K-packed conv weights * BN scale (bf16)
    shift_ref: (1, TC)                beta - running_mean * scale       (f32)
    o_ref:     (1, TH, W, TC)         output tile
    patch_ref: (TH*W, KH*KW*Cin)      VMEM scratch: cached im2col patch (bf16)
    """
    _, TH, W, TC = o_ref.shape
    Cin = x_ref.shape[-1]

    h = pl.program_id(1)
    row0 = pl.multiple_of(h * TH, TH)

    # Rebuild the im2col patch only on the first Cout tile for this (b, h).
    # Cout is the innermost ("arbitrary") grid axis, so it always starts at 0
    # after a (b, h) change; the scratch is per-core under megacore sharding.
    @pl.when(pl.program_id(2) == 0)
    def _build_patch():
        wins = []
        for kh in range(KH):
            for kw in range(KW):
                wins.append(x_ref[0, pl.ds(row0 + kh, TH), pl.ds(kw, W), :])
        patch_ref[...] = jnp.concatenate(wins, axis=-1).reshape(
            TH * W, KH * KW * Cin)

    # One MXU matmul with K = 9*Cin, f32 accumulation.
    acc = jnp.dot(patch_ref[...], w_ref[...], preferred_element_type=jnp.float32)

    # Folded BatchNorm2d (scale already in the weights) -> shift + ReLU.
    y = jnp.maximum(acc + shift_ref[0], 0.0)
    o_ref[0] = y.reshape(TH, W, TC).astype(o_ref.dtype)


def conv_bn_relu_kernel_taps(x_ref, w_ref, shift_ref, o_ref):
    """Large-Cin variant: nine per-tap K=Cin matmuls, no im2col relayout.

    x_ref:     (1, H+2, W+2, Cin)     padded NHWC input (bf16), whole image
    w_ref:     (KH*KW, Cin, TC)       per-tap conv weights * BN scale (bf16)
    shift_ref: (1, TC)                f32 folded-BN shift
    o_ref:     (1, TH, W, TC)         output tile
    """
    _, TH, W, TC = o_ref.shape
    Cin = x_ref.shape[-1]

    h = pl.program_id(1)
    row0 = pl.multiple_of(h * TH, TH)

    acc = jnp.zeros((TH * W, TC), jnp.float32)
    for kh in range(KH):
        for kw in range(KW):
            win = x_ref[0, pl.ds(row0 + kh, TH), pl.ds(kw, W), :]
            acc = acc + jnp.dot(win.reshape(TH * W, Cin),
                                w_ref[kh * KW + kw],
                                preferred_element_type=jnp.float32)

    y = jnp.maximum(acc + shift_ref[0], 0.0)
    o_ref[0] = y.reshape(TH, W, TC).astype(o_ref.dtype)


# --------------------------------------------------------------------------
# Per-generation tiling / VMEM selection
# --------------------------------------------------------------------------
def _tpu_generation():
    try:
        kind = jax.devices()[0].device_kind.lower()
    except Exception:
        return 7
    for g in (7, 6, 5, 4):
        if f"v{g}" in kind or f"tpu{g}" in kind:
            return g
    return 7  # unknown -> assume the smallest-VMEM generation


def _vmem_limit_bytes(gen):
    """Scoped-VMEM limit: ~96 MiB on v5e/v6e (128 MiB phys), ~48 MiB on v7x."""
    cap = None
    try:
        info = pltpu.get_tpu_info()
        for name in ("vmem_capacity_bytes", "vmem_size_bytes", "vmem_bytes"):
            cap = getattr(info, name, None)
            if isinstance(cap, int) and cap >= (16 << 20):
                break
            cap = None
    except Exception:
        cap = None
    if cap is None:
        cap = (64 if gen >= 7 else 128) * 1024 * 1024
    return min(int(0.75 * cap), 100 * 1024 * 1024)


def _pick_tile_c(gen, cout_p):
    # v5e MXU is 4x128x128: TC=256 gives no MXU benefit and doubles the
    # working set, so force 128 there; 256 matches v6e/v7x MXU geometry.
    if gen <= 5:
        return 128
    return 256 if cout_p % 256 == 0 else 128


def _pick_tile_h(H, W, cin, tc, out_bytes, budget_bytes, use_im2col):
    """Largest sublane-aligned H tile whose full resident set fits the budget."""
    def resident(th):
        r = 2 * (H + 2) * (W + 2) * cin * 2        # padded image, bf16, 2 buffers
        r += 3 * KH * KW * cin * tc * 2            # weight block (up to 3 buffers)
        r += 2 * th * W * tc * out_bytes           # output tile, double-buffered
        r += th * W * tc * 4                       # f32 matmul accumulator
        if use_im2col:
            r += th * W * KH * KW * cin * 2        # cached im2col patch (scratch)
        r += 4 * tc * 4                            # shift block
        return r

    divs = [d for d in range(1, H + 1) if H % d == 0]
    fits = [d for d in divs if resident(d) <= budget_bytes] or [divs[0]]
    aligned = [d for d in fits if d % 8 == 0 or d == H] or fits
    return max(aligned)


# --------------------------------------------------------------------------
# Wrapper
# --------------------------------------------------------------------------
@partial(jax.jit,
         static_argnames=("eps", "tile_h", "tile_c", "out_dtype", "im2col"))
def conv_bn_relu(x_nchw, weight_oihw, gamma, beta, running_mean, running_var,
                 eps=1e-5, tile_h=None, tile_c=None, out_dtype=jnp.float32,
                 im2col=None):
    """Conv2d(3x3, stride 1, pad 1, no bias) -> BatchNorm2d(eval) -> ReLU.

    x_nchw: (N, Cin, H, W) f32.  Returns (N, Cout, H, W) in `out_dtype`.
    """
    N, Cin, H, W = x_nchw.shape
    Cout = weight_oihw.shape[0]

    gen = _tpu_generation()
    vmem_limit = _vmem_limit_bytes(gen)

    # im2col only pays off when K = 9*Cin is what fills the MXU depth.
    cin_thresh = 256 if gen >= 6 else 128
    use_im2col = (Cin < cin_thresh) if im2col is None else bool(im2col)

    # --- output-channel padding policy (avoid f32 write amplification) -----
    cout_p128 = -(-Cout // LANE) * LANE
    if Cout % LANE == 0 or cout_p128 <= int(1.25 * Cout):
        Cout_p = cout_p128                 # lane-dense (unmasked) stores
    else:
        Cout_p = Cout                      # full-dim block, masked store

    if tile_c is not None:
        TC = tile_c
    elif Cout_p % LANE == 0:
        TC = _pick_tile_c(gen, Cout_p)
    else:
        TC = Cout_p                        # single full-dim Cout tile
    assert Cout_p % TC == 0 and (TC % LANE == 0 or TC == Cout_p), (Cout_p, TC)

    out_bytes = np.dtype(out_dtype).itemsize
    budget = int(0.7 * vmem_limit)
    TH = tile_h if tile_h is not None else _pick_tile_h(
        H, W, Cin, TC, out_bytes, budget, use_im2col)
    assert H % TH == 0, (H, TH)

    # --- activations: NCHW -> NHWC, bf16, 1-pixel halo pad (padding=1) -----
    x_nhwc = jnp.transpose(x_nchw, (0, 2, 3, 1)).astype(jnp.bfloat16)
    x_pad = jnp.pad(x_nhwc, ((0, 0), (1, 1), (1, 1), (0, 0)))

    # --- folded BatchNorm2d: scale into the weights, shift in the epilogue --
    scale = gamma / jnp.sqrt(running_var + eps)
    shift = beta - running_mean * scale

    w_hwio = jnp.transpose(weight_oihw, (2, 3, 1, 0))           # (KH,KW,Cin,Cout)
    w_mat = w_hwio.reshape(KH * KW * Cin, Cout) * scale[None, :]  # fold BN scale
    w_mat = jnp.pad(w_mat, ((0, 0), (0, Cout_p - Cout))).astype(jnp.bfloat16)

    shift_p = jnp.pad(shift, (0, Cout_p - Cout)).reshape(1, Cout_p)
    shift_p = shift_p.astype(jnp.float32)

    n_ct = Cout_p // TC
    grid = (N, H // TH, n_ct)

    x_spec = pl.BlockSpec((1, H + 2, W + 2, Cin), lambda b, h, c: (b, 0, 0, 0))
    s_spec = pl.BlockSpec((1, TC), lambda b, h, c: (0, c))
    o_spec = pl.BlockSpec((1, TH, W, TC), lambda b, h, c: (b, h, 0, c))

    if use_im2col:
        kernel = conv_bn_relu_kernel_im2col
        w_in = w_mat                                        # (9*Cin, Cout_p)
        w_block, w_idx = (KH * KW * Cin, TC), (lambda b, h, c: (0, c))
        scratch = [pltpu.VMEM((TH * W, KH * KW * Cin), jnp.bfloat16)]
        # Cout axis carries the cached patch -> must stay "arbitrary" (and
        # last); (N, H) stay "parallel" so both v7x TensorCores get work.
        dims = ("parallel", "parallel", "arbitrary")
    else:
        kernel = conv_bn_relu_kernel_taps
        w_in = w_mat.reshape(KH * KW, Cin, Cout_p)          # per-tap weights
        w_block, w_idx = (KH * KW, Cin, TC), (lambda b, h, c: (0, 0, c))
        scratch = []
        dims = ("parallel", "parallel", "parallel")

    if n_ct > 1:
        # Deeper weight pipelining so the per-Cout-tile weight DMA never sits
        # exposed on short steps (tiny extra VMEM: one more small block).
        w_spec = pl.BlockSpec(w_block, w_idx, pipeline_mode=pl.Buffered(3))
    else:
        w_spec = pl.BlockSpec(w_block, w_idx)

    out_nhwc_p = pl.pallas_call(
        kernel,
        out_shape=jax.ShapeDtypeStruct((N, H, W, Cout_p), out_dtype),
        grid_spec=pltpu.PrefetchScalarGridSpec(
            num_scalar_prefetch=0,
            grid=grid,
            in_specs=[x_spec, w_spec, s_spec],
            out_specs=o_spec,
            scratch_shapes=scratch,
        ),
        compiler_params=pltpu.CompilerParams(
            dimension_semantics=dims,
            vmem_limit_bytes=vmem_limit,
        ),
    )(x_pad, w_in, shift_p)

    # Drop zero-padded channels (if any), NHWC -> NCHW to match PyTorch.
    out = out_nhwc_p[..., :Cout] if Cout_p != Cout else out_nhwc_p
    return jnp.transpose(out, (0, 3, 1, 2))


# --------------------------------------------------------------------------
# Initialization exactly as BaseModel.__init__
# --------------------------------------------------------------------------
def init_params(key, cin, cout):
    """Match BaseModel.__init__ initialization exactly."""
    # Conv2d: kaiming_normal_(mode='fan_out', nonlinearity='relu')
    #   std = sqrt(2 / fan_out), fan_out = cout * KH * KW
    fan_out = cout * KH * KW
    std = (2.0 / fan_out) ** 0.5
    weight = std * jax.random.normal(key, (cout, cin, KH, KW), jnp.float32)
    # BatchNorm2d: weight = 1, bias = 0; fresh running stats (mean=0, var=1).
    gamma = jnp.ones((cout,), jnp.float32)
    beta = jnp.zeros((cout,), jnp.float32)
    running_mean = jnp.zeros((cout,), jnp.float32)
    running_var = jnp.ones((cout,), jnp.float32)
    return weight, gamma, beta, running_mean, running_var


if __name__ == "__main__":
    key = jax.random.PRNGKey(0)
    kx, kw_ = jax.random.split(key)

    N, Cin, H, W = 2, 4, 16, 16
    Cout = 8
    eps = 1e-5

    x = jax.random.normal(kx, (N, Cin, H, W), jnp.float32)
    weight, gamma, beta, rmean, rvar = init_params(kw_, Cin, Cout)

    # Reference on the same bf16-rounded, BN-folded operands with f32 accum.
    scale = gamma / jnp.sqrt(rvar + eps)
    shift = beta - rmean * scale
    xb = x.astype(jnp.bfloat16).astype(jnp.float32)
    wb = (weight * scale.reshape(Cout, 1, 1, 1)).astype(jnp.bfloat16).astype(jnp.float32)
    ref = jax.lax.conv_general_dilated(
        xb, wb, window_strides=(1, 1), padding="SAME",
        dimension_numbers=("NCHW", "OIHW", "NCHW"),
        precision=jax.lax.Precision.HIGHEST)
    ref = jnp.maximum(ref + shift.reshape(1, Cout, 1, 1), 0.0)

    # 1) im2col path with the cached-patch kernel (tile_h=8 -> H grid of 2).
    out = conv_bn_relu(x, weight, gamma, beta, rmean, rvar, tile_h=8)
    out = jax.block_until_ready(out)
    assert out.shape == (N, Cout, H, W), out.shape
    err = float(jnp.max(jnp.abs(out - ref)))
    assert jnp.allclose(out, ref, atol=2e-3, rtol=2e-3), err
    assert bool(jnp.all(out >= 0.0))  # ReLU post-condition

    # 2) Per-tap (large-Cin) variant, forced at this small shape to validate.
    out_taps = conv_bn_relu(x, weight, gamma, beta, rmean, rvar,
                            tile_h=8, im2col=False)
    out_taps = jax.block_until_ready(out_taps)
    err_t = float(jnp.max(jnp.abs(out_taps - ref)))
    assert jnp.allclose(out_taps, ref, atol=2e-3, rtol=2e-3), err_t

    # 3) bf16 output path (halved HBM writeback for a bf16 consumer).
    out_bf16 = conv_bn_relu(x, weight, gamma, beta, rmean, rvar,
                            tile_h=8, out_dtype=jnp.bfloat16)
    out_bf16 = jax.block_until_ready(out_bf16)
    assert out_bf16.dtype == jnp.bfloat16
    assert jnp.allclose(out_bf16.astype(jnp.float32), ref, atol=5e-2, rtol=5e-2)

    print("KERNEL_OK")
</pallas_src>

<mosaic_0001>
module attributes {stable_mosaic.version = 11 : i64} {
  func.func @conv_bn_relu_kernel_im2col(%arg0: i32, %arg1: i32, %arg2: i32, %arg3: memref<1x18x18x4xbf16, #tpu.memory_space<vmem>>, %arg4: memref<36x8xbf16, #tpu.memory_space<vmem>>, %arg5: memref<1x8xf32, #tpu.memory_space<vmem>>, %arg6: memref<1x8x16x8xf32, #tpu.memory_space<vmem>>, %arg7: memref<128x36xbf16, #tpu.memory_space<vmem>>) attributes {dimension_semantics = [#tpu.dimension_semantics<parallel>, #tpu.dimension_semantics<parallel>, #tpu.dimension_semantics<arbitrary>], iteration_bounds = array<i64: 2, 2, 1>, scalar_prefetch = 0 : i64, scratch_operands = 1 : i64, tpu.core_type = #tpu.core_type<tc>, window_params = [{transform_indices = @transform_0, window_bounds = array<i64: 1, 18, 18, 4>}, {transform_indices = @transform_1, window_bounds = array<i64: 36, 8>}, {transform_indices = @transform_2, window_bounds = array<i64: 1, 8>}, {transform_indices = @transform_3, window_bounds = array<i64: 1, 8, 16, 8>}]} {
    %c8_i32 = arith.constant 8 : i32
    %0 = arith.muli %arg1, %c8_i32 : i32
    %1 = tpu.assume_multiple %0, 8 : i32
    %c0_i32 = arith.constant 0 : i32
    %2 = arith.cmpi eq, %arg2, %c0_i32 : i32
    %3 = arith.extui %2 : i1 to i32
    %c0_i32_0 = arith.constant 0 : i32
    %4 = arith.cmpi ne, %3, %c0_i32_0 : i32
    scf.if %4 {
      %c0_i32_11 = arith.constant 0 : i32
      %19 = arith.addi %1, %c0_i32_11 : i32
      %c0_12 = arith.constant 0 : index
      %20 = arith.index_cast %19 : i32 to index
      %c0_13 = arith.constant 0 : index
      %c0_14 = arith.constant 0 : index
      %21 = vector.load %arg3[%c0_12, %20, %c0_13, %c0_14] : memref<1x18x18x4xbf16, #tpu.memory_space<vmem>>, vector<1x8x16x4xbf16>
      %22 = vector.shape_cast %21 : vector<1x8x16x4xbf16> to vector<8x16x4xbf16>
      %c0_i32_15 = arith.constant 0 : i32
      %23 = arith.addi %1, %c0_i32_15 : i32
      %c0_16 = arith.constant 0 : index
      %24 = arith.index_cast %23 : i32 to index
      %c1 = arith.constant 1 : index
      %c0_17 = arith.constant 0 : index
      %25 = vector.load %arg3[%c0_16, %24, %c1, %c0_17] : memref<1x18x18x4xbf16, #tpu.memory_space<vmem>>, vector<1x8x16x4xbf16>
      %26 = vector.shape_cast %25 : vector<1x8x16x4xbf16> to vector<8x16x4xbf16>
      %c0_i32_18 = arith.constant 0 : i32
      %27 = arith.addi %1, %c0_i32_18 : i32
      %c0_19 = arith.constant 0 : index
      %28 = arith.index_cast %27 : i32 to index
      %c2 = arith.constant 2 : index
      %c0_20 = arith.constant 0 : index
      %29 = vector.load %arg3[%c0_19, %28, %c2, %c0_20] : memref<1x18x18x4xbf16, #tpu.memory_space<vmem>>, vector<1x8x16x4xbf16>
      %30 = vector.shape_cast %29 : vector<1x8x16x4xbf16> to vector<8x16x4xbf16>
      %c1_i32 = arith.constant 1 : i32
      %31 = arith.addi %1, %c1_i32 : i32
      %c0_21 = arith.constant 0 : index
      %32 = arith.index_cast %31 : i32 to index
      %c0_22 = arith.constant 0 : index
      %c0_23 = arith.constant 0 : index
      %33 = vector.load %arg3[%c0_21, %32, %c0_22, %c0_23] : memref<1x18x18x4xbf16, #tpu.memory_space<vmem>>, vector<1x8x16x4xbf16>
      %34 = vector.shape_cast %33 : vector<1x8x16x4xbf16> to vector<8x16x4xbf16>
      %c1_i32_24 = arith.constant 1 : i32
      %35 = arith.addi %1, %c1_i32_24 : i32
      %c0_25 = arith.constant 0 : index
      %36 = arith.index_cast %35 : i32 to index
      %c1_26 = arith.constant 1 : index
      %c0_27 = arith.constant 0 : index
      %37 = vector.load %arg3[%c0_25, %36, %c1_26, %c0_27] : memref<1x18x18x4xbf16, #tpu.memory_space<vmem>>, vector<1x8x16x4xbf16>
      %38 = vector.shape_cast %37 : vector<1x8x16x4xbf16> to vector<8x16x4xbf16>
      %c1_i32_28 = arith.constant 1 : i32
      %39 = arith.addi %1, %c1_i32_28 : i32
      %c0_29 = arith.constant 0 : index
      %40 = arith.index_cast %39 : i32 to index
      %c2_30 = arith.constant 2 : index
      %c0_31 = arith.constant 0 : index
      %41 = vector.load %arg3[%c0_29, %40, %c2_30, %c0_31] : memref<1x18x18x4xbf16, #tpu.memory_space<vmem>>, vector<1x8x16x4xbf16>
      %42 = vector.shape_cast %41 : vector<1x8x16x4xbf16> to vector<8x16x4xbf16>
      %c2_i32 = arith.constant 2 : i32
      %43 = arith.addi %1, %c2_i32 : i32
      %c0_32 = arith.constant 0 : index
      %44 = arith.index_cast %43 : i32 to index
      %c0_33 = arith.constant 0 : index
      %c0_34 = arith.constant 0 : index
      %45 = vector.load %arg3[%c0_32, %44, %c0_33, %c0_34] : memref<1x18x18x4xbf16, #tpu.memory_space<vmem>>, vector<1x8x16x4xbf16>
      %46 = vector.shape_cast %45 : vector<1x8x16x4xbf16> to vector<8x16x4xbf16>
      %c2_i32_35 = arith.constant 2 : i32
      %47 = arith.addi %1, %c2_i32_35 : i32
      %c0_36 = arith.constant 0 : index
      %48 = arith.index_cast %47 : i32 to index
      %c1_37 = arith.constant 1 : index
      %c0_38 = arith.constant 0 : index
      %49 = vector.load %arg3[%c0_36, %48, %c1_37, %c0_38] : memref<1x18x18x4xbf16, #tpu.memory_space<vmem>>, vector<1x8x16x4xbf16>
      %50 = vector.shape_cast %49 : vector<1x8x16x4xbf16> to vector<8x16x4xbf16>
      %c2_i32_39 = arith.constant 2 : i32
      %51 = arith.addi %1, %c2_i32_39 : i32
      %c0_40 = arith.constant 0 : index
      %52 = arith.index_cast %51 : i32 to index
      %c2_41 = arith.constant 2 : index
      %c0_42 = arith.constant 0 : index
      %53 = vector.load %arg3[%c0_40, %52, %c2_41, %c0_42] : memref<1x18x18x4xbf16, #tpu.memory_space<vmem>>, vector<1x8x16x4xbf16>
      %54 = vector.shape_cast %53 : vector<1x8x16x4xbf16> to vector<8x16x4xbf16>
      %55 = tpu.concatenate %22, %26, %30, %34, %38, %42, %46, %50, %54 in 2 : vector<8x16x4xbf16>, vector<8x16x4xbf16>, vector<8x16x4xbf16>, vector<8x16x4xbf16>, vector<8x16x4xbf16>, vector<8x16x4xbf16>, vector<8x16x4xbf16>, vector<8x16x4xbf16>, vector<8x16x4xbf16> -> vector<8x16x36xbf16>
      %56 = vector.shape_cast %55 : vector<8x16x36xbf16> to vector<128x36xbf16>
      %c0_43 = arith.constant 0 : index
      %c0_44 = arith.constant 0 : index
      %57 = vector.load %arg7[%c0_43, %c0_44] : memref<128x36xbf16, #tpu.memory_space<vmem>>, vector<128x36xbf16>
      tpu.vector_store %arg7[%c0_43, %c0_44], %56 {strides = array<i32>} : memref<128x36xbf16, #tpu.memory_space<vmem>>, vector<128x36xbf16>,
    } else {
    }
    %c0 = arith.constant 0 : index
    %c0_1 = arith.constant 0 : index
    %5 = vector.load %arg7[%c0, %c0_1] : memref<128x36xbf16, #tpu.memory_space<vmem>>, vector<128x36xbf16>
    %c0_2 = arith.constant 0 : index
    %c0_3 = arith.constant 0 : index
    %6 = vector.load %arg4[%c0_2, %c0_3] : memref<36x8xbf16, #tpu.memory_space<vmem>>, vector<36x8xbf16>
    %cst = arith.constant dense<0.000000e+00> : vector<128x8xf32>
    %7 = tpu.matmul %5, %6, %cst {dimension_numbers = #tpu.dot_dimension_numbers<[1], [0], [0], [1], [0, 0, 1, 1], [], []>} : vector<128x36xbf16>, vector<36x8xbf16>, vector<128x8xf32> -> vector<128x8xf32>
    %c0_4 = arith.constant 0 : index
    %c0_5 = arith.constant 0 : index
    %8 = vector.load %arg5[%c0_4, %c0_5] : memref<1x8xf32, #tpu.memory_space<vmem>>, vector<1x8xf32>
    %9 = vector.shape_cast %8 : vector<1x8xf32> to vector<8xf32>
    %10 = vector.shape_cast %9 : vector<8xf32> to vector<1x8xf32>
    %11 = vector.broadcast %10 : vector<1x8xf32> to vector<128x8xf32>
    %12 = arith.addf %7, %11 : vector<128x8xf32>
    %cst_6 = arith.constant 0.000000e+00 : f32
    %13 = vector.broadcast %cst_6 : f32 to vector<128x8xf32>
    %14 = arith.maximumf %12, %13 : vector<128x8xf32>
    %15 = vector.shape_cast %14 : vector<128x8xf32> to vector<8x16x8xf32>
    %c0_7 = arith.constant 0 : index
    %c0_8 = arith.constant 0 : index
    %c0_9 = arith.constant 0 : index
    %c0_10 = arith.constant 0 : index
    %16 = vector.load %arg6[%c0_7, %c0_8, %c0_9, %c0_10] : memref<1x8x16x8xf32, #tpu.memory_space<vmem>>, vector<1x8x16x8xf32>
    %17 = vector.shape_cast %16 : vector<1x8x16x8xf32> to vector<8x16x8xf32>
    %18 = vector.shape_cast %15 : vector<8x16x8xf32> to vector<1x8x16x8xf32>
    tpu.vector_store %arg6[%c0_7, %c0_8, %c0_9, %c0_10], %18 {strides = array<i32>} : memref<1x8x16x8xf32, #tpu.memory_space<vmem>>, vector<1x8x16x8xf32>,
    return
  }
  func.func @transform_0(%arg0: i32, %arg1: i32, %arg2: i32) -> (i32, i32, i32, i32) {
    %c0_i32 = arith.constant 0 : i32
    %c0_i32_0 = arith.constant 0 : i32
    %c0_i32_1 = arith.constant 0 : i32
    %c0_i32_2 = arith.constant 0 : i32
    return %arg0, %c0_i32, %c0_i32_0, %c0_i32_1 : i32, i32, i32, i32
  }
  func.func @transform_1(%arg0: i32, %arg1: i32, %arg2: i32) -> (i32, i32) {
    %c0_i32 = arith.constant 0 : i32
    %c0_i32_0 = arith.constant 0 : i32
    return %c0_i32, %arg2 : i32, i32
  }
  func.func @transform_2(%arg0: i32, %arg1: i32, %arg2: i32) -> (i32, i32) {
    %c0_i32 = arith.constant 0 : i32
    %c0_i32_0 = arith.constant 0 : i32
    return %c0_i32, %arg2 : i32, i32
  }
  func.func @transform_3(%arg0: i32, %arg1: i32, %arg2: i32) -> (i32, i32, i32, i32) {
    %c0_i32 = arith.constant 0 : i32
    %c0_i32_0 = arith.constant 0 : i32
    return %arg0, %arg1, %c0_i32, %arg2 : i32, i32, i32, i32
  }
}

</mosaic_0001>

<bundles_post_ra>
// kernel: conv_bn_relu.1
= control target key start
LH: loop header
LB: loop body
LE: loop exit
PB: predicated region body
PF: predicated region fallthrough
CT: control target
= control target key end

     0   :  { %s2135_s12 = smov 0   ;;  %s2137_s13 = smov 0   ;;  %s2743_s0 = inlined_call_operand.vmem [shape: bf16[2,18,18,4], index: 0, kind: input, shape index: {}]   ;;  %s2744_s1 = inlined_call_operand.vmem [shape: bf16[36,8], index: 1, kind: input, shape index: {}]   ;;  %s2745_s2 = inlined_call_operand.vmem [shape: f32[1,8], index: 2, kind: input, shape index: {}]   ;;  %s2746_s3 = inlined_call_operand.vmem [shape: f32[2,16,16,8], index: 3, kind: output, shape index: {}]  }
   0x1   :  { %s2139_s14 = smov 0   ;;  %s2141_s15 = smov 0  }
   0x2   :  { %s2143_s16 = smov 0  }
   0x3 LB: > { %s28_s17 = sadd.s32 1, %s2097_s14  ;;  %s32_s18 = sadd.s32 1, %s2101_s15  ;;  %s2105_s16 = sphi %s2143_s16, %s13_s16   ;;  %s2101_s15 = sphi %s2141_s15, %s2750_s15   ;;  %s2097_s14 = sphi %s2139_s14, %s2749_s14   ;;  %s2093_s13 = sphi %s2137_s13, %s2748_s13   ;;  %s2089_s12 = sphi %s2135_s12, %s2747_s12  }
   0x4   : > { %p30_p0 = scmp.ge.s32.totalorder %s28_s17, 2  ;;  %p1706_p1 = scmp.ge.s32.totalorder %s2105_s16, 1 }
   0x5   : > { %p177_p2 = scmp.lt.s32.totalorder %s2105_s16, 5 }
   0x6   : > { %s2752_s17 = smov (%p30_p0, %s28_s17), 0  ;;  %s2754_s18 = smov (!%p30_p0, %s32_s18), %s2101_s15 }
   0x7   : > { %p178_p3 = pnand %p1706_p1, %p177_p2  ;;  %p34_p4 = scmp.ge.s32.totalorder %s2754_s18, 2 }
   0x8   : > { %p216_p5 = scmp.lt.s32.totalorder (!%p178_p3), %s2093_s13, 1  ;;  %s1893_s19 = smul.u32 (!%p178_p3), 96, %s2089_s12 }
   0x9   : > { %s2756_s18 = smov (%p34_p4, %s2754_s18), 0  ;;  %181 = sbr.rel (%p178_p3) target bundleno = 479 (0x1df), region = 32 }
   0xa   : > { %s2107_s25 = smov (!%p178_p3), 12   ;;  %s2108_s26 = smov (!%p178_p3), 8  }
   0xb   : > { %s2109_s27 = smov (!%p178_p3), 4   ;;  %s2110_s28 = smov (!%p178_p3), 16  }
   0xc   : > { %s2111_s29 = smov (!%p178_p3), 20   ;;  %s2112_s30 = smov (!%p178_p3), 24  }
   0xd   : > { %s2113_s4 = smov (!%p178_p3), 28   ;;  %s2114_s5 = smov (!%p178_p3), 32  }
   0xe   : > { %s2758_s13 = smov (!%p216_p5, %s2093_s13), 1  ;;  %vm556_vm0 = vcmask 1046528   ;;  %vm419_vm1 = vsmask.f32 7424  ;;  %vm1426_vm2 = vcmask 1041408   ;;  %vm1109_vm3 = vcmask 31744  }
   0xf   : > { %s1935_s20 = smul.u32 216, %s2758_s13  ;;  %vm1126_vm4 = vcmask 64512   ;;  %vm1143_vm5 = vcmask 97280   ;;  %vm1160_vm6 = vcmask 130048   ;;  %vm1177_vm7 = vcmask 162816   ;;  %s1710_s21 = sshll.u32 %s2758_s13, 5 }
  0x10   : > { %vm1194_vm8 = vcmask 195584   ;;  %vm1211_vm9 = vcmask 228352   ;;  %vm1228_vm10 = vcmask 261120   ;;  %vm1301_vm11 = vcmask 289792  }
  0x11   : > { %s220_s23 = scalar_lea.vmem %s2743_s0, %s1935_s20  ;;  %vm1401_vm12 = vcmask 293888  }
  0x12   : > { %s2174_s24 = scalar_lea.vmem %s220_s23, %s1893_s19  ;;  %s1708_s19 = sshll.u32 %s2089_s12, 3 }
  0x13   : > { %v1725_v0 = vld [vmem:[%s2174_s24 + $0x3c] sm:$0xf]  ;;  %v2178_v1 = vld [vmem:[%s2174_s24 + $0x40] sm:$0xf]  ;;  %v1717_v3 = vld [vmem:[%s2174_s24 + $0xc] sm:$0xf] }
  0x14   : > { %v2181_v2 = vcombine.low %v1725_v0, %v2178_v1  ;;  %v2185_v4 = vld [vmem:[%s2174_s24 + $0x10] sm:$0xf]  ;;  %v260_v6 = vld [vmem:[%s2174_s24 + $0x34] sm:$0xf]  ;;  %v252_v12 = vld [vmem:[%s2174_s24 + $0x4] sm:$0xf] }
  0x15   : > { %v2188_v5 = vcombine.low %v1717_v3, %v2185_v4  ;;  %v279_v7 = vld [vmem:[%s2174_s24 + $0x30] sm:$0xe]  ;;  %v2195_v8 = vld [vmem:[%s2174_s24 + $0x38] ss:$0 sps:$4 sm:$0x11]   ;;  %p231_p6 = scmp.lt.s32.totalorder %s1708_s19, 15 }
  0x16   : > { %645 = vrot.lane.b32.xlu1 %v2181_v2, %s2107_s25  ;;  %v1803_v9 = vcombine.low %v279_v7, %v260_v6  ;;  %v259_v10 = vld [vmem:[%s2174_s24 + $0x30] sm:$0xf]  ;;  %v728_v11 = vshll.u32 %v2181_v2, 16  ;;  %v570_v14 = vrot.slane %v2195_v8, 1  ;;  %v275_v15 = vld [vmem:[%s2174_s24] sm:$0xe] }
  0x17   : > { %637 = vrot.lane.b32.xlu0 %v2188_v5, %s2107_s25  ;;  %v251_v16 = vld [vmem:[%s2174_s24] sm:$0xf]  ;;  %v680_v17 = vshll.u32 %v2188_v5, 16  ;;  %v2206_v18 = vcombine.low %v259_v10, %v260_v6  ;;  %v1991_v19 = vld [vmem:[%s2174_s24 + $0x8] ss:$0 sps:$4 sm:$0x11]   ;;  %v1799_v20 = vcombine.low %v275_v15, %v252_v12 }
  0x18   : > { %v569_v13 = vrot.slane %v1803_v9, 1  ;;  %v261_v21 = vld [vmem:[%s2174_s24 + $0x3c] sm:$0xf]  ;;  %v2211_v23 = vcombine.low %v251_v16, %v252_v12  ;;  %v262_v24 = vld [vmem:[%s2174_s24 + $0x40] sm:$0xf]  ;;  %v558_v27 = vrot.slane %v1991_v19, 1 }
  0x19   : > { %v280_v25 = vld [vmem:[%s2174_s24 + $0x3c] sm:$0xe]  ;;  %v557_v26 = vrot.slane %v1799_v20, 1  ;;  %v1995_v28 = vld [vmem:[%s2174_s24 + $0x44] ss:$0 sps:$4 sm:$0x11]   ;;  %v2218_v31 = vcombine.low %v261_v21, %v262_v24 }
  0x1a   : > { %v571_v22 = vsel %vm556_vm0, %v569_v13, %v570_v14  ;;  %v1804_v29 = vcombine.low %v280_v25, %v262_v24  ;;  %v469_v30 = vshrl.u32 %v2206_v18, 16  ;;  %v253_v32 = vld [vmem:[%s2174_s24 + $0xc] sm:$0xf]  ;;  %v254_v33 = vld [vmem:[%s2174_s24 + $0x10] sm:$0xf]  ;;  %v573_v36 = vrot.slane %v1995_v28, 1 }
  0x1b   : > { %589 = vrot.lane.b32.xlu1 %v571_v22, %s2108_s26  ;;  %v559_v34 = vsel %vm556_vm0, %v557_v26, %v558_v27  ;;  %v276_v37 = vld [vmem:[%s2174_s24 + $0xc] sm:$0xe]  ;;  %v2224_v38 = vcombine.low %v253_v32, %v254_v33  ;;  %v1998_v39 = vld [vmem:[%s2174_s24 + $0x14] ss:$0 sps:$4 sm:$0x11]   ;;  %v421_v41 = vshrl.u32 %v2211_v23, 16 }
  0x1c   : > { %v572_v35 = vrot.slane %v1804_v29, 1  ;;  %581 = vrot.lane.b32.xlu0 %v559_v34, %s2108_s26  ;;  %v1800_v40 = vcombine.low %v276_v37, %v254_v33  ;;  %v423_v42 = vshll.u32 %v2211_v23, 16  ;;  %v428_v43 = vshll.u32 %v1991_v19, 16  ;;  %v1727_v52 = vld [vmem:[%s2174_s24 + $0x48] sm:$0xf]  ;;  %s2760_s19 = smov (!%p231_p6, %s1708_s19), 15 }
  0x1d   : > { %v433_v45 = vshrl.u32 %v2224_v38, 16  ;;  %v435_v46 = vshll.u32 %v2224_v38, 16  ;;  %v481_v47 = vshrl.u32 %v2218_v31, 16  ;;  %v561_v49 = vrot.slane %v1998_v39, 1  ;;  %v2238_v57 = vld [vmem:[%s2174_s24 + $0x4c] sm:$0xf] }
  0x1e   : > { %v574_v44 = vsel %vm556_vm0, %v572_v35, %v573_v36  ;;  %v560_v48 = vrot.slane %v1800_v40, 1  ;;  %v440_v50 = vshll.u32 %v1998_v39, 16  ;;  %v425_v51 = vrot.slane %v423_v42, 1  ;;  %v1719_v62 = vld [vmem:[%s2174_s24 + $0x18] sm:$0xf]  ;;  %s1709_s20 = sshll.u32 %s2760_s19, 1 }
  0x1f   : > { %591 = vrot.lane.b32.xlu1 %v574_v44, %s2108_s26  ;;  %v437_v53 = vrot.slane %v435_v46, 1  ;;  %v430_v54 = vrot.slane %v428_v43, 1  ;;  %v483_v55 = vshll.u32 %v2218_v31, 16  ;;  %v488_v56 = vshll.u32 %v1995_v28, 16  ;;  %v2244_v63 = vld [vmem:[%s2174_s24 + $0x1c] sm:$0xf]  ;;  %s238_s22 = sadd.s32 %s1710_s21, %s1709_s20 }
  0x20   : > { %v562_v58 = vsel %vm556_vm0, %v560_v48, %v561_v49  ;;  %v442_v59 = vrot.slane %v440_v50, 1  ;;  %v426_v60 = vor.u32 %v425_v51, %v421_v41  ;;  %v471_v61 = vshll.u32 %v2206_v18, 16  ;;  %v2251_v13 = vld [vmem:[%s2174_s24 + $0x44] ss:$0 sps:$4 sm:$0x11]  }
  0x21   : > { %583 = vrot.lane.b32.xlu0 %v562_v58, %s2108_s26  ;;  %v438_v0 = vor.u32 %v437_v53, %v433_v45  ;;  %v485_v3 = vrot.slane %v483_v55, 1  ;;  %v490_v6 = vrot.slane %v488_v56, 1  ;;  %v476_v7 = vshll.u32 %v2195_v8, 16  ;;  %v2256_v20 = vld [vmem:[%s2174_s24 + $0x14] ss:$0 sps:$4 sm:$0x11]  }
  0x22   : > { %v431_v9 = vsel %vm419_vm1, %v426_v60, %v430_v54  ;;  %v473_v10 = vrot.slane %v471_v61, 1  ;;  %v1812_v12 = vcombine.low %v1727_v52, %v2238_v57  ;;  %v1808_v19 = vcombine.low %v1719_v62, %v2244_v63  ;;  %v2263_v24 = vld [vmem:[%s2174_s24 + $0x50] ss:$0 sps:$4 sm:$0x11]   ;;  %v1745_v35 = vld [vmem:[%s2174_s24 + $0x3c] sm:$0xe] }
  0x23   : > { %v443_v14 = vsel %vm419_vm1, %v438_v0, %v442_v59  ;;  %v486_v15 = vor.u32 %v485_v3, %v481_v47  ;;  %v478_v16 = vrot.slane %v476_v7, 1  ;;  %v726_v21 = vshrl.u32 %v2181_v2, 16  ;;  %v1741_v43 = vld [vmem:[%s2174_s24 + $0xc] sm:$0xe]  ;;  %v1746_v45 = vld [vmem:[%s2174_s24 + $0x48] sm:$0xe] }
  0x24   : > { %518 = vrot.lane.b32.xlu1 %v443_v14, %s2109_s27  ;;  %v474_v8 = vor.u32 %v473_v10, %v469_v30  ;;  %v730_v22 = vrot.slane %v728_v11, 1  ;;  %v740_v26 = vshll.u32 %v1812_v12, 16  ;;  %v733_v27 = vshll.u32 %v2251_v13, 16  ;;  %v2274_v11 = vld [vmem:[%s2174_s24 + $0x20] ss:$0 sps:$4 sm:$0x11]  }
  0x25   : > { %516 = vrot.lane.b32.xlu0 %v431_v9, %s2109_s27  ;;  %v491_v25 = vsel %vm419_vm1, %v486_v15, %v490_v6  ;;  %v678_v28 = vshrl.u32 %v2188_v5, 16  ;;  %v692_v30 = vshll.u32 %v1808_v19, 16  ;;  %v682_v32 = vrot.slane %v680_v17, 1  ;;  %v1742_v50 = vld [vmem:[%s2174_s24 + $0x18] sm:$0xe] }
  0x26   : > { %v479_v29 = vsel %vm419_vm1, %v474_v8, %v478_v16  ;;  %v685_v2 = vshll.u32 %v2256_v20, 16  ;;  %v731_v33 = vor.u32 %v730_v22, %v726_v21  ;;  %v735_v34 = vrot.slane %v733_v27, 1  ;;  %v1759_v55 = vld [vmem:[%s2174_s24 + $0x48] sm:$0xf]  ;;  %v2294_v56 = vld [vmem:[%s2174_s24 + $0x4c] sm:$0xf] }
  0x27   : > { %v683_v36 = vor.u32 %v682_v32, %v678_v28  ;;  %v738_v37 = vshrl.u32 %v1812_v12, 16  ;;  %v742_v39 = vrot.slane %v740_v26, 1  ;;  %v745_v5 = vshll.u32 %v2263_v24, 16  ;;  %v1751_v3 = vld [vmem:[%s2174_s24 + $0x18] sm:$0xf] }
  0x28   : > { %526 = vrot.lane.b32.xlu1 %v491_v25, %s2109_s27  ;;  %v687_v17 = vrot.slane %v685_v2, 1  ;;  %v690_v40 = vshrl.u32 %v1808_v19, 16  ;;  %v694_v41 = vrot.slane %v692_v30, 1  ;;  %v697_v42 = vshll.u32 %v2274_v11, 16  ;;  %v2305_v6 = vld [vmem:[%s2174_s24 + $0x1c] sm:$0xf] }
  0x29   : > { %524 = vrot.lane.b32.xlu0 %v479_v29, %s2109_s27  ;;  %v1827_v44 = vcombine.low %v1745_v35, %v2178_v1  ;;  %v736_v46 = vsel %vm419_vm1, %v731_v33, %v735_v34  ;;  %v743_v47 = vor.u32 %v742_v39, %v738_v37  ;;  %v747_v48 = vrot.slane %v745_v5, 1  ;;  %v1753_v16 = vld [vmem:[%s2174_s24 + $0x24] sm:$0xf]  ;;  %v2325_v21 = vld [vmem:[%s2174_s24 + $0x50] ss:$0 sps:$4 sm:$0x11]  }
  0x2a   : > { %v1823_v49 = vcombine.low %v1741_v43, %v2185_v4  ;;  %v688_v51 = vsel %vm419_vm1, %v683_v36, %v687_v17  ;;  %v695_v52 = vor.u32 %v694_v41, %v690_v40  ;;  %v699_v53 = vrot.slane %v697_v42, 1  ;;  %v2332_v27 = vld [vmem:[%s2174_s24 + $0x20] ss:$0 sps:$4 sm:$0x11]   ;;  %v263_v37 = vld [vmem:[%s2174_s24 + $0x48] sm:$0xf] }
  0x2b   : > { %v825_v1 = vrot.slane %v1827_v44, 1  ;;  %v826_v54 = vrot.slane %v2251_v13, 1  ;;  %v1828_v58 = vcombine.low %v1746_v45, %v2238_v57  ;;  %v1824_v4 = vcombine.low %v1742_v50, %v2244_v63  ;;  %v1761_v63 = vld [vmem:[%s2174_s24 + $0x54] sm:$0xf]  ;;  %v2314_v13 = vld [vmem:[%s2174_s24 + $0x58] sm:$0xf] }
  0x2c   : > { %647 = vrot.lane.b32.xlu1 %v1812_v12, %s2107_s25  ;;  %v748_v59 = vsel %vm419_vm1, %v743_v47, %v747_v48  ;;  %v700_v60 = vsel %vm419_vm1, %v695_v52, %v699_v53  ;;  %v813_v61 = vrot.slane %v1823_v49, 1  ;;  %v814_v62 = vrot.slane %v2256_v20, 1  ;;  %v2341_v34 = vld [vmem:[%s2174_s24 + $0x2c] ss:$0 sps:$4 sm:$0x11]  }
  0x2d   : > { %639 = vrot.lane.b32.xlu0 %v1808_v19, %s2107_s25  ;;  %v1835_v0 = vcombine.low %v1759_v55, %v2294_v56  ;;  %v827_v57 = vsel %vm556_vm0, %v825_v1, %v826_v54  ;;  %v828_v7 = vrot.slane %v1828_v58, 1  ;;  %v829_v9 = vrot.slane %v2263_v24, 1  ;;  %v2320_v19 = vld [vmem:[%s2174_s24 + $0x28] sm:$0xf]  ;;  %v2346_v39 = vld [vmem:[%s2174_s24 + $0x4c] sm:$0xf] }
  0x2e   : > { %v816_v10 = vrot.slane %v1824_v4, 1  ;;  %v817_v12 = vrot.slane %v2274_v11, 1  ;;  %v815_v14 = vsel %vm556_vm0, %v813_v61, %v814_v62  ;;  %v1831_v15 = vcombine.low %v1751_v3, %v2305_v6  ;;  %v2337_v11 = vld [vmem:[%s2174_s24 + $0x5c] ss:$0 sps:$4 sm:$0x11]  }
  0x2f   : > { %v984_v20 = vshll.u32 %v1835_v0, 16  ;;  %v1836_v8 = vcombine.low %v1761_v63, %v2314_v13  ;;  %v830_v22 = vsel %vm556_vm0, %v828_v7, %v829_v9  ;;  %v1832_v24 = vcombine.low %v1753_v16, %v2320_v19  ;;  %v255_v17 = vld [vmem:[%s2174_s24 + $0x18] sm:$0xf]  ;;  %v2350_v40 = vld [vmem:[%s2174_s24 + $0x1c] sm:$0xf] }
  0x30   : > { %781 = vrot.lane.b32.xlu1 %v736_v46, %s2110_s28  ;;  %v818_v25 = vsel %vm556_vm0, %v816_v10, %v817_v12  ;;  %v936_v26 = vshll.u32 %v1831_v15, 16  ;;  %v982_v28 = vshrl.u32 %v1835_v0, 16  ;;  %v989_v32 = vshll.u32 %v2325_v21, 16  ;;  %v1779_v41 = vld [vmem:[%s2174_s24 + $0x48] sm:$0xe] }
  0x31   : > { %773 = vrot.lane.b32.xlu0 %v688_v51, %s2110_s28  ;;  %v986_v29 = vrot.slane %v984_v20, 1  ;;  %v996_v30 = vshll.u32 %v1836_v8, 16  ;;  %v934_v2 = vshrl.u32 %v1831_v15, 16  ;;  %v948_v33 = vshll.u32 %v1832_v24, 16  ;;  %v1775_v46 = vld [vmem:[%s2174_s24 + $0x18] sm:$0xe] }
  0x32   : > { %v938_v35 = vrot.slane %v936_v26, 1  ;;  %v941_v36 = vshll.u32 %v2332_v27, 16  ;;  %v991_v42 = vrot.slane %v989_v32, 1  ;;  %v994_v43 = vshrl.u32 %v1836_v8, 16  ;;  %v257_v9 = vld [vmem:[%s2174_s24 + $0x24] sm:$0xf] }
  0x33   : > { %v987_v5 = vor.u32 %v986_v29, %v982_v28  ;;  %v998_v44 = vrot.slane %v996_v30, 1  ;;  %v1001_v45 = vshll.u32 %v2337_v11, 16  ;;  %v946_v47 = vshrl.u32 %v1832_v24, 16  ;;  %v2368_v4 = vld [vmem:[%s2174_s24 + $0x50] ss:$0 sps:$4 sm:$0x11]  }
  0x34   : > { %783 = vrot.lane.b32.xlu1 %v748_v59, %s2110_s28  ;;  %v950_v48 = vrot.slane %v948_v33, 1  ;;  %v953_v49 = vshll.u32 %v2341_v34, 16  ;;  %v2359_v50 = vcombine.low %v263_v37, %v2346_v39  ;;  %v939_v51 = vor.u32 %v938_v35, %v934_v2  ;;  %v2385_v10 = vld [vmem:[%s2174_s24 + $0x28] sm:$0xf]  ;;  %v1780_v12 = vld [vmem:[%s2174_s24 + $0x54] sm:$0xe] }
  0x35   : > { %775 = vrot.lane.b32.xlu0 %v700_v60, %s2110_s28  ;;  %v943_v52 = vrot.slane %v941_v36, 1  ;;  %v2362_v53 = vcombine.low %v255_v17, %v2350_v40  ;;  %v1851_v1 = vcombine.low %v1779_v41, %v2294_v56  ;;  %v1847_v54 = vcombine.low %v1775_v46, %v2305_v6  ;;  %v2374_v56 = vld [vmem:[%s2174_s24 + $0x20] ss:$0 sps:$4 sm:$0x11]   ;;  %v265_v6 = vld [vmem:[%s2174_s24 + $0x54] sm:$0xf] }
  0x36   : > { %v999_v55 = vor.u32 %v998_v44, %v994_v43  ;;  %v1003_v58 = vrot.slane %v1001_v45, 1  ;;  %v992_v59 = vsel %vm419_vm1, %v987_v5, %v991_v42  ;;  %v951_v60 = vor.u32 %v950_v48, %v946_v47  ;;  %v2410_v36 = vld [vmem:[%s2174_s24 + $0x5c] ss:$0 sps:$4 sm:$0x11]  }
  0x37   : > { %v955_v61 = vrot.slane %v953_v49, 1  ;;  %v495_v62 = vshll.u32 %v2359_v50, 16  ;;  %v447_v3 = vshll.u32 %v2362_v53, 16  ;;  %v1081_v63 = vrot.slane %v1851_v1, 1 }
  0x38   : > { %845 = vrot.lane.b32.xlu1 %v827_v57, %s2111_s29  ;;  %v2380_v57 = vld [vmem:[%s2174_s24 + $0x58] sm:$0xf]  ;;  %v1082_v7 = vrot.slane %v2325_v21, 1  ;;  %v1070_v16 = vrot.slane %v2332_v27, 1  ;;  %v500_v20 = vshll.u32 %v2368_v4, 16  ;;  %v445_v26 = vshrl.u32 %v2362_v53, 16 }
  0x39   : > { %837 = vrot.lane.b32.xlu0 %v815_v14, %s2111_s29  ;;  %v1004_v14 = vsel %vm419_vm1, %v999_v55, %v1003_v58  ;;  %v956_v21 = vsel %vm419_vm1, %v951_v60, %v955_v61  ;;  %v449_v28 = vrot.slane %v447_v3, 1  ;;  %v452_v27 = vshll.u32 %v2374_v56, 16 }
  0x3a   : > { %v2402_v29 = vcombine.low %v257_v9, %v2385_v10  ;;  %v1852_v30 = vcombine.low %v1780_v12, %v2314_v13  ;;  %v502_v2 = vrot.slane %v500_v20, 1  ;;  %v1083_v33 = vsel %vm556_vm0, %v1081_v63, %v1082_v7  ;;  %v2415_v13 = vld [vmem:[%s2174_s24 + $0x2c] ss:$0 sps:$4 sm:$0x11]   ;;  %v278_v63 = vld [vmem:[%s2174_s24 + $0x24] sm:$0xe] }
  0x3b   : > { %v450_v17 = vor.u32 %v449_v28, %v445_v26  ;;  %v454_v41 = vrot.slane %v452_v27, 1  ;;  %v1085_v43 = vrot.slane %v2337_v11, 1  ;;  %v1073_v45 = vrot.slane %v2341_v34, 1  ;;  %v277_v34 = vld [vmem:[%s2174_s24 + $0x18] sm:$0xe] }
  0x3c   : > { %847 = vrot.lane.b32.xlu1 %v830_v22, %s2111_s29  ;;  %v493_v22 = vshrl.u32 %v2359_v50, 16  ;;  %v1084_v42 = vrot.slane %v1852_v30, 1  ;;  %v512_v49 = vshll.u32 %v2410_v36, 16  ;;  %v457_v1 = vshrl.u32 %v2402_v29, 16  ;;  %v1731_v28 = vld [vmem:[%s2174_s24 + $0x60] sm:$0xf] }
  0x3d   : > { %839 = vrot.lane.b32.xlu0 %v818_v25, %s2111_s29  ;;  %v2397_v25 = vcombine.low %v265_v6, %v2380_v57  ;;  %v1801_v61 = vcombine.low %v277_v34, %v2350_v40  ;;  %v282_v6 = vld [vmem:[%s2174_s24 + $0x54] sm:$0xe]  ;;  %v576_v7 = vrot.slane %v2368_v4, 1  ;;  %v564_v9 = vrot.slane %v2374_v56, 1  ;;  %v1721_v56 = vld [vmem:[%s2174_s24 + $0x24] sm:$0xf] }
  0x3e   : > { %v1086_v55 = vsel %vm556_vm0, %v1084_v42, %v1085_v43  ;;  %v1802_v4 = vcombine.low %v278_v63, %v2385_v10  ;;  %v2462_v10 = vld [vmem:[%s2174_s24 + $0x64] sm:$0xf]  ;;  %v2483_v42 = vld [vmem:[%s2174_s24 + $0x2c] ss:$0 sps:$4 sm:$0x11]  }
  0x3f   : > { %v507_v37 = vshll.u32 %v2397_v25, 16  ;;  %v505_v47 = vshrl.u32 %v2397_v25, 16  ;;  %v563_v40 = vrot.slane %v1801_v61, 1  ;;  %v2057_v43 = vld [vmem:[%s2744_s1 + $0x8] sm:$0xff]   ;;  %v2060_v34 = vld [vmem:[%s2744_s1] sm:$0xff]  }
  0x40   : > { %901 = vrot.lane.b32.xlu1 %v1835_v0, %s2112_s30  ;;  %v944_v0 = vsel %vm419_vm1, %v939_v51, %v943_v52  ;;  %v281_v51 = vld [vmem:[%s2174_s24 + $0x48] sm:$0xe]  ;;  %v455_v52 = vsel %vm419_vm1, %v450_v17, %v454_v41  ;;  %v566_v30 = vrot.slane %v1802_v4, 1  ;;  %v2478_v41 = vld [vmem:[%s2174_s24 + $0x5c] ss:$0 sps:$4 sm:$0x11]  }
  0x41   : > { %893 = vrot.lane.b32.xlu0 %v1831_v15, %s2112_s30  ;;  %v1069_v15 = vrot.slane %v1847_v54, 1  ;;  %v509_v48 = vrot.slane %v507_v37, 1  ;;  %v464_v54 = vshll.u32 %v2415_v13, 16  ;;  %v1805_v60 = vcombine.low %v281_v51, %v2346_v39  ;;  %v2056_v37 = vld [vmem:[%s2744_s1 + $0x10] ss:$0 sps:$4 sm:$0x33]  }
  0x42   : > { %v565_v27 = vsel %vm556_vm0, %v563_v40, %v564_v9  ;;  %1933 = vmatprep.subr.msk.bf16.mxu0 %vm1426_vm2, %v2056_v37  ;;  %1934 = vmatprep.subr.msk.bf16.mxu1 %vm1426_vm2, %v2056_v37  ;;  %v1743_v9 = vld [vmem:[%s2174_s24 + $0x24] sm:$0xe] }
  0x43   : > { %v1071_v5 = vsel %vm556_vm0, %v1069_v15, %v1070_v16  ;;  %v510_v58 = vor.u32 %v509_v48, %v505_v47  ;;  %v466_v3 = vrot.slane %v464_v54, 1  ;;  %v575_v12 = vrot.slane %v1805_v60, 1  ;;  %v1729_v15 = vld [vmem:[%s2174_s24 + $0x54] sm:$0xf]  ;;  %v2446_v16 = vld [vmem:[%s2174_s24 + $0x58] sm:$0xf] }
  0x44   : > { %903 = vrot.lane.b32.xlu1 %v1836_v8, %s2112_s30  ;;  %v1776_v8 = vld [vmem:[%s2174_s24 + $0x24] sm:$0xe]  ;;  %v1428_v47 = vsel %vm1426_vm2, %v2056_v37, 0  ;;  %v757_v48 = vshll.u32 %v2478_v41, 16 }
  0x45   : > { %895 = vrot.lane.b32.xlu0 %v1832_v24, %s2112_s30  ;;  %v497_v24 = vrot.slane %v495_v62, 1  ;;  %v1848_v32 = vcombine.low %v1776_v8, %v2320_v19  ;;  %v459_v19 = vshll.u32 %v2402_v29, 16  ;;  %v2452_v8 = vld [vmem:[%s2174_s24 + $0x28] sm:$0xf]  ;;  %1906 = vmatpush3.bf16.msra.mxu0 %v1428_v47 }
  0x46   : > { %v1809_v26 = vcombine.low %v1721_v56, %v2452_v8  ;;  %v2496_v54 = vld [vmem:[%s2174_s24 + $0x38] ss:$0 sps:$4 sm:$0x11]   ;;  %1930 = vmatpush3.bf16.msra.mxu1 %v1428_v47  ;;  %1907 = vmatprep.subr.bf16.mxu0 %v2057_v43 }
  0x47   : > { %v498_v35 = vor.u32 %v497_v24, %v493_v22  ;;  %v1072_v44 = vrot.slane %v1848_v32, 1  ;;  %v461_v11 = vrot.slane %v459_v19, 1  ;;  %v579_v24 = vrot.slane %v2410_v36, 1  ;;  %1928 = vmatprep.subr.bf16.mxu1 %v2057_v43 }
  0x48   : > { %1037 = vrot.lane.b32.xlu1 %v992_v59, %s2113_s4  ;;  %v514_v59 = vrot.slane %v512_v49, 1  ;;  %v567_v32 = vrot.slane %v2415_v13, 1  ;;  %v1814_v36 = vcombine.low %v1731_v28, %v2462_v10  ;;  %v704_v17 = vshll.u32 %v1809_v26, 16  ;;  %v2522_v28 = vld [vmem:[%s2174_s24 + $0x64] sm:$0xf] }
  0x49   : > { %1029 = vrot.lane.b32.xlu0 %v944_v0, %s2113_s4  ;;  %v503_v46 = vsel %vm419_vm1, %v498_v35, %v502_v2  ;;  %v1074_v62 = vsel %vm556_vm0, %v1072_v44, %v1073_v45  ;;  %v462_v0 = vor.u32 %v461_v11, %v457_v1  ;;  %v1723_v2 = vld [vmem:[%s2174_s24 + $0x30] sm:$0xf]  ;;  %v702_v49 = vshrl.u32 %v1809_v26, 16  ;;  %1908 = vmatpush3.bf16.msra.mxu0 %v2057_v43 }
  0x4a   : > { %v515_v39 = vsel %vm419_vm1, %v510_v58, %v514_v59  ;;  %v568_v13 = vsel %vm556_vm0, %v566_v30, %v567_v32  ;;  %v764_v44 = vshll.u32 %v1814_v36, 16  ;;  %v706_v51 = vrot.slane %v704_v17, 1  ;;  %1931 = vmatpush3.bf16.msra.mxu1 %v2057_v43  ;;  %1909 = vmatprep.subr.bf16.mxu0 %v2060_v34 }
  0x4b   : > { %v467_v20 = vsel %vm419_vm1, %v462_v0, %v466_v3  ;;  %v709_v11 = vshll.u32 %v2483_v42, 16  ;;  %v762_v58 = vshrl.u32 %v1814_v36, 16  ;;  %v759_v59 = vrot.slane %v757_v48, 1  ;;  %v1747_v0 = vld [vmem:[%s2174_s24 + $0x54] sm:$0xe]  ;;  %1929 = vmatprep.subr.bf16.mxu1 %v2060_v34 }
  0x4c   : > { %1039 = vrot.lane.b32.xlu1 %v1004_v14, %s2113_s4  ;;  %v1806_v14 = vcombine.low %v282_v6, %v2380_v57  ;;  %v577_v57 = vsel %vm556_vm0, %v575_v12, %v576_v7  ;;  %v707_v60 = vor.u32 %v706_v51, %v702_v49  ;;  %v766_v61 = vrot.slane %v764_v44, 1  ;;  %v1757_v44 = vld [vmem:[%s2174_s24 + $0x3c] sm:$0xf]  ;;  %v2052_v51 = vld [vmem:[%s2174_s24 + $0x68] ss:$0 sps:$4 sm:$0x11]  }
  0x4d   : > { %1031 = vrot.lane.b32.xlu0 %v956_v21, %s2113_s4  ;;  %v1813_v21 = vcombine.low %v1729_v15, %v2446_v16  ;;  %v711_v3 = vrot.slane %v709_v11, 1  ;;  %v721_v7 = vshll.u32 %v2496_v54, 16  ;;  %v1825_v15 = vcombine.low %v1743_v9, %v2452_v8  ;;  %1910 = vmatpush3.bf16.msra.mxu0 %v2060_v34  ;;  %v2053_v11 = vld [vmem:[%s2174_s24 + $0x38] ss:$0 sps:$4 sm:$0x11]  }
  0x4e   : > { %v578_v22 = vrot.slane %v1806_v14, 1  ;;  %v767_v40 = vor.u32 %v766_v61, %v762_v58  ;;  %1932 = vmatpush3.bf16.msra.mxu1 %v2060_v34  ;;  %v832_v8 = vrot.slane %v2478_v41, 1  ;;  %v1765_v41 = vld [vmem:[%s2174_s24 + $0x6c] sm:$0xf]  ;;  %v823_v43 = vrot.slane %v2496_v54, 1 }
  0x4f   : > { %v752_v35 = vshll.u32 %v1813_v21, 16  ;;  %v750_v45 = vshrl.u32 %v1813_v21, 16  ;;  %v712_v4 = vsel %vm419_vm1, %v707_v60, %v711_v3  ;;  %v819_v32 = vrot.slane %v1825_v15, 1  ;;  %v2054_v61 = vld [vmem:[%s2174_s24 + $0x74] ss:$0 sps:$4 sm:$0x11]  }
  0x50   : > { %1101 = vrot.lane.b32.xlu1 %v1083_v33, %s2114_s5  ;;  %v2468_v33 = vld [vmem:[%s2174_s24 + $0x34] sm:$0xf]  ;;  %v1013_v58 = vshll.u32 %v2052_v51, 16  ;;  %v2055_v3 = vld [vmem:[%s2174_s24 + $0x44] ss:$0 sps:$4 sm:$0x11]  }
  0x51   : > { %1093 = vrot.lane.b32.xlu0 %v1071_v5, %s2114_s5  ;;  %v580_v5 = vsel %vm556_vm0, %v578_v22, %v579_v24  ;;  %v1810_v19 = vcombine.low %v1723_v2, %v2468_v33  ;;  %v1755_v2 = vld [vmem:[%s2174_s24 + $0x30] sm:$0xf] }
  0x53   : > { %v716_v1 = vshll.u32 %v1810_v19, 16  ;;  %v714_v6 = vshrl.u32 %v1810_v19, 16 }
  0x54   : > { %528 = vrot.lane.b32.xlu1 %v503_v46, %s2109_s27  ;;  %v754_v46 = vrot.slane %v752_v35, 1  ;;  %v2529_v35 = vld [vmem:[%s2174_s24 + $0x34] sm:$0xf] }
  0x55   : > { %520 = vrot.lane.b32.xlu0 %v455_v52, %s2109_s27  ;;  %v2492_v52 = vld [vmem:[%s2174_s24 + $0x68] ss:$0 sps:$4 sm:$0x11]   ;;  %v718_v63 = vrot.slane %v716_v1, 1  ;;  %v1833_v17 = vcombine.low %v1755_v2, %v2529_v35 }
  0x57   : > { %v719_v56 = vor.u32 %v718_v63, %v714_v6  ;;  %v960_v49 = vshll.u32 %v1833_v17, 16 }
  0x58   : > { %1103 = vrot.lane.b32.xlu1 %v1086_v55, %s2114_s5  ;;  %v755_v55 = vor.u32 %v754_v46, %v750_v45  ;;  %v2545_v45 = vld [vmem:[%s2174_s24 + $0x40] sm:$0xf] }
  0x59   : > { %1095 = vrot.lane.b32.xlu0 %v1074_v62, %s2114_s5  ;;  %v769_v62 = vshll.u32 %v2492_v52, 16  ;;  %v1834_v1 = vcombine.low %v1757_v44, %v2545_v45  ;;  %v962_v60 = vrot.slane %v960_v49, 1 }
  0x5a   : > { %v760_v12 = vsel %vm419_vm1, %v755_v55, %v759_v59  ;;  %v958_v59 = vshrl.u32 %v1833_v17, 16 }
  0x5b   : > { %v771_v14 = vrot.slane %v769_v62, 1  ;;  %v972_v62 = vshll.u32 %v1834_v1, 16  ;;  %v970_v15 = vshrl.u32 %v1834_v1, 16 }
  0x5c   : > { %530 = vrot.lane.b32.xlu1 %v515_v39, %s2109_s27  ;;  %v1829_v39 = vcombine.low %v1747_v0, %v2446_v16  ;;  %v1744_v16 = vld [vmem:[%s2174_s24 + $0x30] sm:$0xe]  ;;  %v965_v0 = vshll.u32 %v2053_v11, 16  ;;  %v963_v9 = vor.u32 %v962_v60, %v958_v59 }
  0x5d   : > { %522 = vrot.lane.b32.xlu0 %v467_v20, %s2109_s27  ;;  %v1748_v20 = vld [vmem:[%s2174_s24 + $0x60] sm:$0xe]  ;;  %v772_v22 = vsel %vm419_vm1, %v767_v40, %v771_v14 }
  0x5e   : > { %v831_v24 = vrot.slane %v1829_v39, 1  ;;  %v1781_v40 = vld [vmem:[%s2174_s24 + $0x60] sm:$0xe]  ;;  %v967_v14 = vrot.slane %v965_v0, 1 }
  0x60   : > { %593 = vrot.lane.b32.xlu1 %v577_v57, %s2108_s26  ;;  %v1830_v57 = vcombine.low %v1748_v20, %v2462_v10  ;;  %v820_v10 = vrot.slane %v2483_v42, 1  ;;  %v833_v37 = vsel %vm556_vm0, %v831_v24, %v832_v8  ;;  %v974_v20 = vrot.slane %v972_v62, 1  ;;  %v1782_v8 = vld [vmem:[%s2174_s24 + $0x6c] sm:$0xe] }
  0x61   : > { %585 = vrot.lane.b32.xlu0 %v565_v27, %s2108_s26  ;;  %v1826_v27 = vcombine.low %v1744_v16, %v2468_v33  ;;  %v835_v33 = vrot.slane %v2492_v52, 1 }
  0x63   : > { %v822_v42 = vrot.slane %v1826_v27, 1 }
  0x64   : > { %595 = vrot.lane.b32.xlu1 %v580_v5, %s2108_s26  ;;  %v834_v5 = vrot.slane %v1830_v57, 1 }
  0x65   : > { %587 = vrot.lane.b32.xlu0 %v568_v13, %s2108_s26  ;;  %v2539_v13 = vld [vmem:[%s2174_s24 + $0x70] sm:$0xf]  ;;  %v824_v52 = vsel %vm556_vm0, %v822_v42, %v823_v43  ;;  %v1091_v43 = vrot.slane %v2054_v61, 1 }
  0x66   : > { %v1838_v47 = vcombine.low %v1765_v41, %v2539_v13  ;;  %v836_v48 = vsel %vm556_vm0, %v834_v5, %v835_v33  ;;  %v1088_v5 = vrot.slane %v2052_v51, 1  ;;  %v1076_v41 = vrot.slane %v2053_v11, 1 }
  0x68   : > { %649 = vrot.lane.b32.xlu1 %v1813_v21, %s2107_s25  ;;  %v723_v21 = vrot.slane %v721_v7, 1  ;;  %v1020_v54 = vshll.u32 %v1838_v47, 16  ;;  %v1018_v63 = vshrl.u32 %v1838_v47, 16  ;;  %v1015_v7 = vrot.slane %v1013_v58, 1 }
  0x69   : > { %641 = vrot.lane.b32.xlu0 %v1809_v26, %s2107_s25  ;;  %v1763_v26 = vld [vmem:[%s2174_s24 + $0x60] sm:$0xf] }
  0x6a   : > { %v724_v30 = vsel %vm419_vm1, %v719_v56, %v723_v21  ;;  %v1022_v39 = vrot.slane %v1020_v54, 1  ;;  %v1777_v56 = vld [vmem:[%s2174_s24 + $0x30] sm:$0xe]  ;;  %v1853_v21 = vcombine.low %v1781_v40, %v2522_v28 }
  0x6b   : > { %v1849_v24 = vcombine.low %v1777_v56, %v2529_v35 }
  0x6c   : > { %651 = vrot.lane.b32.xlu1 %v1814_v36, %s2107_s25  ;;  %v1837_v36 = vcombine.low %v1763_v26, %v2522_v28  ;;  %v1023_v57 = vor.u32 %v1022_v39, %v1018_v63  ;;  %v968_v26 = vsel %vm419_vm1, %v963_v9, %v967_v14  ;;  %v1854_v28 = vcombine.low %v1782_v8, %v2539_v13 }
  0x6d   : > { %643 = vrot.lane.b32.xlu0 %v1810_v19, %s2107_s25  ;;  %v821_v19 = vsel %vm556_vm0, %v819_v32, %v820_v10  ;;  %v1778_v10 = vld [vmem:[%s2174_s24 + $0x3c] sm:$0xe]  ;;  %s1711_s25 = sshll.u32 %s238_s22, 3 }
  0x6e   : > { %v1008_v46 = vshll.u32 %v1837_v36, 16  ;;  %v1006_v34 = vshrl.u32 %v1837_v36, 16  ;;  %v1850_v35 = vcombine.low %v1778_v10, %v2545_v45  ;;  %v1090_v13 = vrot.slane %v1854_v28, 1 }
  0x70   : > { %785 = vrot.lane.b32.xlu1 %v760_v12, %s2110_s28  ;;  %v1010_v55 = vrot.slane %v1008_v46, 1  ;;  %v1025_v12 = vshll.u32 %v2054_v61, 16  ;;  %v1092_v49 = vsel %vm556_vm0, %v1090_v13, %v1091_v43 }
  0x71   : > { %777 = vrot.lane.b32.xlu0 %v712_v4, %s2110_s28  ;;  %v977_v4 = vshll.u32 %v2055_v3, 16 }
  0x72   : > { %v1011_v6 = vor.u32 %v1010_v55, %v1006_v34 }
  0x73   : > { %v979_v32 = vrot.slane %v977_v4, 1 }
  0x74   : > { %787 = vrot.lane.b32.xlu1 %v772_v22, %s2110_s28  ;;  %v1016_v16 = vsel %vm419_vm1, %v1011_v6, %v1015_v7  ;;  %v1027_v22 = vrot.slane %v1025_v12, 1 }
  0x75   : > { %779 = vrot.lane.b32.xlu0 %v724_v30, %s2110_s28  ;;  %v975_v30 = vor.u32 %v974_v20, %v970_v15  ;;  %s2694_s28 = scalar_lea.vmem %s2746_s3, %s1711_s25 }
  0x77   : > { %v980_v33 = vsel %vm419_vm1, %v975_v30, %v979_v32 }
  0x78   : > { %849 = vrot.lane.b32.xlu1 %v833_v37, %s2111_s29  ;;  %v1087_v37 = vrot.slane %v1853_v21, 1 }
  0x79   : > { %841 = vrot.lane.b32.xlu0 %v821_v19, %s2111_s29 }
  0x7a   : > { %v1089_v42 = vsel %vm556_vm0, %v1087_v37, %v1088_v5 }
  0x7c   : > { %851 = vrot.lane.b32.xlu1 %v836_v48, %s2111_s29  ;;  %v1079_v48 = vrot.slane %v2055_v3, 1 }
  0x7d   : > { %843 = vrot.lane.b32.xlu0 %v824_v52, %s2111_s29 }
  0x80   : > { %905 = vrot.lane.b32.xlu1 %v1837_v36, %s2112_s30  ;;  %v1028_v36 = vsel %vm419_vm1, %v1023_v57, %v1027_v22 }
  0x81   : > { %897 = vrot.lane.b32.xlu0 %v1833_v17, %s2112_s30  ;;  %v1075_v17 = vrot.slane %v1849_v24, 1 }
  0x83   : > { %v1077_v46 = vsel %vm556_vm0, %v1075_v17, %v1076_v41 }
  0x84   : > { %907 = vrot.lane.b32.xlu1 %v1838_v47, %s2112_s30  ;;  %v1078_v47 = vrot.slane %v1850_v35, 1 }
  0x85   : > { %899 = vrot.lane.b32.xlu0 %v1834_v1, %s2112_s30 }
  0x86   : > { %v1080_v51 = vsel %vm556_vm0, %v1078_v47, %v1079_v48 }
  0x88   : > { %v2570_v27 = vpop.permute.xlu1 %645  ;;  %1041 = vrot.lane.b32.xlu1 %v1016_v16, %s2113_s4 }
  0x89   : > { %v638_v2 = vpop.permute.xlu0 %637  ;;  %1033 = vrot.lane.b32.xlu0 %v968_v26, %s2113_s4 }
  0x8c   : > { %1043 = vrot.lane.b32.xlu1 %v1028_v36, %s2113_s4 }
  0x8d   : > { %v590_v19 = vpop.permute.xlu1 %589  ;;  %1035 = vrot.lane.b32.xlu0 %v980_v33, %s2113_s4 }
  0x8e   : > { %v582_v44 = vpop.permute.xlu0 %581 }
  0x90   : > { %1105 = vrot.lane.b32.xlu1 %v1089_v42, %s2114_s5 }
  0x91   : > { %v592_v45 = vpop.permute.xlu1 %591  ;;  %1097 = vrot.lane.b32.xlu0 %v1077_v46, %s2114_s5 }
  0x93   : > { %v584_v52 = vpop.permute.xlu0 %583 }
  0x94   : > { %1107 = vrot.lane.b32.xlu1 %v1092_v49, %s2114_s5 }
  0x95   : > { %1099 = vrot.lane.b32.xlu0 %v1080_v51, %s2114_s5 }
  0x96   : > { %v519_v1 = vpop.permute.xlu1 %518 }
  0x97   : > { %v517_v11 = vpop.permute.xlu0 %516 }
  0x98   : > { %v1111_v14 = vsel %vm1109_vm3, %v2211_v23, %v517_v11 }
  0x99   : > { %v1128_v56 = vsel %vm1126_vm4, %v1111_v14, %v582_v44 }
  0x9a   : > { %v527_v54 = vpop.permute.xlu1 %526  ;;  %v1145_v57 = vsel %vm1143_vm5, %v1128_v56, %v638_v2  ;;  %v1113_v2 = vsel %vm1109_vm3, %v2224_v38, %v519_v1 }
  0x9b   : > { %v525_v34 = vpop.permute.xlu0 %524  ;;  %v1130_v42 = vsel %vm1126_vm4, %v1113_v2, %v584_v52 }
  0x9c   : > { %v1119_v40 = vsel %vm1109_vm3, %v2206_v18, %v525_v34 }
  0x9d   : > { %v1136_v20 = vsel %vm1126_vm4, %v1119_v40, %v590_v19 }
  0x9e   : > { %v648_v55 = vpop.permute.xlu1 %647  ;;  %v1153_v21 = vsel %vm1143_vm5, %v1136_v20, %v2570_v27  ;;  %v1121_v27 = vsel %vm1109_vm3, %v2218_v31, %v527_v54 }
  0x9f   : > { %v640_v58 = vpop.permute.xlu0 %639  ;;  %v1138_v31 = vsel %vm1126_vm4, %v1121_v27, %v592_v45 }
  0xa0   : > { %v1155_v19 = vsel %vm1143_vm5, %v1138_v31, %v648_v55  ;;  %v1147_v13 = vsel %vm1143_vm5, %v1130_v42, %v640_v58 }
  0xa2   : > { %v782_v59 = vpop.permute.xlu1 %781 }
  0xa3   : > { %v774_v60 = vpop.permute.xlu0 %773  ;;  %v1170_v18 = vsel %vm1160_vm6, %v1153_v21, %v782_v59 }
  0xa4   : > { %v1162_v22 = vsel %vm1160_vm6, %v1145_v57, %v774_v60 }
  0xa6   : > { %v784_v61 = vpop.permute.xlu1 %783 }
  0xa7   : > { %v776_v62 = vpop.permute.xlu0 %775  ;;  %v1172_v43 = vsel %vm1160_vm6, %v1155_v19, %v784_v61 }
  0xa8   : > { %v1164_v46 = vsel %vm1160_vm6, %v1147_v13, %v776_v62 }
  0xaa   : > { %v846_v0 = vpop.permute.xlu1 %845 }
  0xab   : > { %v838_v3 = vpop.permute.xlu0 %837  ;;  %v1187_v24 = vsel %vm1177_vm7, %v1170_v18, %v846_v0 }
  0xac   : > { %v1179_v8 = vsel %vm1177_vm7, %v1162_v22, %v838_v3 }
  0xae   : > { %v848_v6 = vpop.permute.xlu1 %847 }
  0xaf   : > { %v840_v63 = vpop.permute.xlu0 %839  ;;  %v1189_v47 = vsel %vm1177_vm7, %v1172_v43, %v848_v6 }
  0xb0   : > { %v1181_v48 = vsel %vm1177_vm7, %v1164_v46, %v840_v63 }
  0xb2   : > { %v902_v7 = vpop.permute.xlu1 %901 }
  0xb3   : > { %v894_v9 = vpop.permute.xlu0 %893  ;;  %v1204_v26 = vsel %vm1194_vm8, %v1187_v24, %v902_v7 }
  0xb4   : > { %v1196_v30 = vsel %vm1194_vm8, %v1179_v8, %v894_v9 }
  0xb6   : > { %v904_v39 = vpop.permute.xlu1 %903 }
  0xb7   : > { %v896_v12 = vpop.permute.xlu0 %895  ;;  %v1206_v45 = vsel %vm1194_vm8, %v1189_v47, %v904_v39 }
  0xb8   : > { %v1198_v49 = vsel %vm1194_vm8, %v1181_v48, %v896_v12 }
  0xba   : > { %v1038_v15 = vpop.permute.xlu1 %1037 }
  0xbb   : > { %v1030_v4 = vpop.permute.xlu0 %1029  ;;  %v1221_v32 = vsel %vm1211_vm9, %v1204_v26, %v1038_v15 }
  0xbc   : > { %v1213_v28 = vsel %vm1211_vm9, %v1196_v30, %v1030_v4 }
  0xbe   : > { %v1040_v16 = vpop.permute.xlu1 %1039 }
  0xbf   : > { %v1032_v23 = vpop.permute.xlu0 %1031  ;;  %v1223_v51 = vsel %vm1211_vm9, %v1206_v45, %v1040_v16 }
  0xc0   : > { %v1215_v1 = vsel %vm1211_vm9, %v1198_v49, %v1032_v23 }
  0xc2   : > { %v1102_v10 = vpop.permute.xlu1 %1101 }
  0xc3   : > { %v1238_v36 = vsel %vm1228_vm10, %v1221_v32, %v1102_v10  ;;  %v1094_v37 = vpop.permute.xlu0 %1093 }
  0xc4   : > { %v1863_v5 = vcombine.low %v1238_v36, %v1238_v36  ;;  %v1864_v35 = vcombine.high %v1238_v36, %v1238_v36  ;;  %v1230_v33 = vsel %vm1228_vm10, %v1213_v28, %v1094_v37 }
  0xc5   : > { %v1855_v17 = vcombine.low %v1230_v33, %v1230_v33  ;;  %v1856_v41 = vcombine.high %v1230_v33, %v1230_v33 }
  0xc6   : > { %1310 = vst.msk [vmem:[#allocation2 + $0x20] sm:$0xf] %vm1301_vm11, %v1863_v5  ;;  %1311 = vst.msk [vmem:[#allocation2 + $0x24] sm:$0xf] %vm1301_vm11, %v1864_v35  ;;  %v529_v38 = vpop.permute.xlu1 %528 }
  0xc7   : > { %1302 = vst.msk [vmem:[#allocation2] sm:$0xf] %vm1301_vm11, %v1855_v17  ;;  %1303 = vst.msk [vmem:[#allocation2 + $0x4] sm:$0xf] %vm1301_vm11, %v1856_v41  ;;  %v521_v44 = vpop.permute.xlu0 %520  ;;  %v1123_v10 = vsel %vm1109_vm3, %v2359_v50, %v529_v38 }
  0xc8   : > { %v1115_v2 = vsel %vm1109_vm3, %v2362_v53, %v521_v44 }
  0xca   : > { %v1104_v52 = vpop.permute.xlu1 %1103 }
  0xcb   : > { %v1240_v11 = vsel %vm1228_vm10, %v1223_v51, %v1104_v52  ;;  %v1096_v54 = vpop.permute.xlu0 %1095 }
  0xcc   : > { %v1865_v34 = vcombine.low %v1240_v11, %v1240_v11  ;;  %v1866_v55 = vcombine.high %v1240_v11, %v1240_v11  ;;  %v1232_v58 = vsel %vm1228_vm10, %v1215_v1, %v1096_v54 }
  0xcd   : > { %v1857_v59 = vcombine.low %v1232_v58, %v1232_v58  ;;  %v1858_v60 = vcombine.high %v1232_v58, %v1232_v58  ;;  %v2059_v61 = vld [vmem:[#allocation2 + $0x20] sm:$0xff]  }
  0xce   : > { %1312 = vst.msk [vmem:[#allocation2 + $0x28] sm:$0xf] %vm1301_vm11, %v1865_v34  ;;  %1313 = vst.msk [vmem:[#allocation2 + $0x2c] sm:$0xf] %vm1301_vm11, %v1866_v55  ;;  %v531_v62 = vpop.permute.xlu1 %530  ;;  %v2058_v0 = vld [vmem:[#allocation2] sm:$0xff]   ;;  %1919 = vmatprep.mubr.msk.bf16.mxu1 %vm1401_vm12, %v2059_v61 }
  0xcf   : > { %1304 = vst.msk [vmem:[#allocation2 + $0x8] sm:$0xf] %vm1301_vm11, %v1857_v59  ;;  %1305 = vst.msk [vmem:[#allocation2 + $0xc] sm:$0xf] %vm1301_vm11, %v1858_v60  ;;  %v523_v3 = vpop.permute.xlu0 %522  ;;  %1911 = vmatprep.mubr.msk.bf16.mxu0 %vm1401_vm12, %v2058_v0  ;;  %v1125_v17 = vsel %vm1109_vm3, %v2397_v25, %v531_v62 }
  0xd0   : > { %v1117_v50 = vsel %vm1109_vm3, %v2402_v29, %v523_v3 }
  0xd2   : > { %v594_v6 = vpop.permute.xlu1 %593 }
  0xd3   : > { %v586_v63 = vpop.permute.xlu0 %585  ;;  %v1140_v28 = vsel %vm1126_vm4, %v1123_v10, %v594_v6 }
  0xd4   : > { %v1132_v36 = vsel %vm1126_vm4, %v1115_v2, %v586_v63 }
  0xd5   : > { %v2062_v7 = vld [vmem:[#allocation2 + $0x28] sm:$0xff]  }
  0xd6   : > { %v596_v9 = vpop.permute.xlu1 %595  ;;  %v2061_v39 = vld [vmem:[#allocation2 + $0x8] sm:$0xff]   ;;  %1920 = vmatmul.mubr.msk.bf16.vlgmr.msra.gmra.mxu1 %vm1401_vm12, %v2062_v7 }
  0xd7   : > { %v588_v12 = vpop.permute.xlu0 %587  ;;  %1912 = vmatmul.mubr.msk.bf16.vlgmr.msra.gmra.mxu0 %vm1401_vm12, %v2061_v39  ;;  %v1142_v19 = vsel %vm1126_vm4, %v1125_v17, %v596_v9 }
  0xd8   : > { %v1134_v42 = vsel %vm1126_vm4, %v1117_v50, %v588_v12 }
  0xda   : > { %v650_v40 = vpop.permute.xlu1 %649 }
  0xdb   : > { %v642_v14 = vpop.permute.xlu0 %641  ;;  %v1157_v37 = vsel %vm1143_vm5, %v1140_v28, %v650_v40 }
  0xdc   : > { %v1149_v35 = vsel %vm1143_vm5, %v1132_v36, %v642_v14 }
  0xde   : > { %v652_v15 = vpop.permute.xlu1 %651 }
  0xdf   : > { %v644_v20 = vpop.permute.xlu0 %643  ;;  %v1159_v43 = vsel %vm1143_vm5, %v1142_v19, %v652_v15 }
  0xe0   : > { %v1151_v44 = vsel %vm1143_vm5, %v1134_v42, %v644_v20 }
  0xe2   : > { %v786_v4 = vpop.permute.xlu1 %785 }
  0xe3   : > { %v778_v56 = vpop.permute.xlu0 %777  ;;  %v1174_v33 = vsel %vm1160_vm6, %v1157_v37, %v786_v4  ;;  %v1871_v4 = vld [vmem:[%s2745_s2] ss:$0 sm:$0xff] }
  0xe4   : > { %v1166_v53 = vsel %vm1160_vm6, %v1149_v35, %v778_v56 }
  0xe6   : > { %v788_v21 = vpop.permute.xlu1 %787 }
  0xe7   : > { %v780_v16 = vpop.permute.xlu0 %779  ;;  %v1176_v47 = vsel %vm1160_vm6, %v1159_v43, %v788_v21 }
  0xe8   : > { %v1168_v48 = vsel %vm1160_vm6, %v1151_v44, %v780_v16 }
  0xea   : > { %v850_v18 = vpop.permute.xlu1 %849 }
  0xeb   : > { %v842_v57 = vpop.permute.xlu0 %841  ;;  %v1191_v41 = vsel %vm1177_vm7, %v1174_v33, %v850_v18 }
  0xec   : > { %v1183_v38 = vsel %vm1177_vm7, %v1166_v53, %v842_v57 }
  0xee   : > { %v852_v23 = vpop.permute.xlu1 %851 }
  0xef   : > { %v844_v22 = vpop.permute.xlu0 %843  ;;  %v1193_v52 = vsel %vm1177_vm7, %v1176_v47, %v852_v23 }
  0xf0   : > { %v1185_v34 = vsel %vm1177_vm7, %v1168_v48, %v844_v22 }
  0xf2   : > { %v906_v24 = vpop.permute.xlu1 %905 }
  0xf3   : > { %v898_v8 = vpop.permute.xlu0 %897  ;;  %v1208_v13 = vsel %vm1194_vm8, %v1191_v41, %v906_v24 }
  0xf4   : > { %v1200_v25 = vsel %vm1194_vm8, %v1183_v38, %v898_v8 }
  0xf6   : > { %v908_v26 = vpop.permute.xlu1 %907 }
  0xf7   : > { %v900_v27 = vpop.permute.xlu0 %899  ;;  %v1210_v55 = vsel %vm1194_vm8, %v1193_v52, %v908_v26 }
  0xf8   : > { %v1202_v60 = vsel %vm1194_vm8, %v1185_v34, %v900_v27 }
  0xfa   : > { %v1042_v30 = vpop.permute.xlu1 %1041 }
  0xfb   : > { %v1034_v32 = vpop.permute.xlu0 %1033  ;;  %v1225_v29 = vsel %vm1211_vm9, %v1208_v13, %v1042_v30 }
  0xfc   : > { %v1217_v45 = vsel %vm1211_vm9, %v1200_v25, %v1034_v32 }
  0xfe   : > { %v1044_v5 = vpop.permute.xlu1 %1043 }
  0xff   : > { %v1036_v31 = vpop.permute.xlu0 %1035  ;;  %v1227_v61 = vsel %vm1211_vm9, %v1210_v55, %v1044_v5 }
 0x100   : > { %v1219_v0 = vsel %vm1211_vm9, %v1202_v60, %v1036_v31 }
 0x102   : > { %v1106_v46 = vpop.permute.xlu1 %1105 }
 0x103   : > { %v1242_v49 = vsel %vm1228_vm10, %v1225_v29, %v1106_v46  ;;  %v1098_v51 = vpop.permute.xlu0 %1097 }
 0x104   : > { %v1867_v1 = vcombine.low %v1242_v49, %v1242_v49  ;;  %v1868_v11 = vcombine.high %v1242_v49, %v1242_v49  ;;  %v1234_v54 = vsel %vm1228_vm10, %v1217_v45, %v1098_v51 }
 0x105   : > { %v1859_v58 = vcombine.low %v1234_v54, %v1234_v54  ;;  %v1860_v59 = vcombine.high %v1234_v54, %v1234_v54 }
 0x106   : > { %1314 = vst.msk [vmem:[#allocation2 + $0x30] sm:$0xf] %vm1301_vm11, %v1867_v1  ;;  %1315 = vst.msk [vmem:[#allocation2 + $0x34] sm:$0xf] %vm1301_vm11, %v1868_v11  ;;  %v1108_v62 = vpop.permute.xlu1 %1107 }
 0x107   : > { %1306 = vst.msk [vmem:[#allocation2 + $0x10] sm:$0xf] %vm1301_vm11, %v1859_v58  ;;  %1307 = vst.msk [vmem:[#allocation2 + $0x14] sm:$0xf] %vm1301_vm11, %v1860_v59  ;;  %v1244_v3 = vsel %vm1228_vm10, %v1227_v61, %v1108_v62  ;;  %v1100_v6 = vpop.permute.xlu0 %1099 }
 0x108   : > { %v1869_v63 = vcombine.low %v1244_v3, %v1244_v3  ;;  %v1870_v7 = vcombine.high %v1244_v3, %v1244_v3  ;;  %v1236_v9 = vsel %vm1228_vm10, %v1219_v0, %v1100_v6 }
 0x109   : > { %v1861_v39 = vcombine.low %v1236_v9, %v1236_v9  ;;  %v1862_v12 = vcombine.high %v1236_v9, %v1236_v9 }
 0x10a   : > { %1316 = vst.msk [vmem:[#allocation2 + $0x38] sm:$0xf] %vm1301_vm11, %v1869_v63  ;;  %1317 = vst.msk [vmem:[#allocation2 + $0x3c] sm:$0xf] %vm1301_vm11, %v1870_v7 }
 0x10b   : > { %1308 = vst.msk [vmem:[#allocation2 + $0x18] sm:$0xf] %vm1301_vm11, %v1861_v39  ;;  %1309 = vst.msk [vmem:[#allocation2 + $0x1c] sm:$0xf] %vm1301_vm11, %v1862_v12 }
 0x10d   : > { %v2064_v40 = vld [vmem:[#allocation2 + $0x30] sm:$0xff]  }
 0x10e   : > { %v2063_v14 = vld [vmem:[#allocation2 + $0x10] sm:$0xff]   ;;  %1923 = vmatprep.mubr.msk.bf16.mxu1 %vm1401_vm12, %v2064_v40 }
 0x10f   : > { %1915 = vmatprep.mubr.msk.bf16.mxu0 %vm1401_vm12, %v2063_v14 }
 0x111   : > { %v2066_v15 = vld [vmem:[#allocation2 + $0x38] sm:$0xff]  }
 0x112   : > { %v2065_v20 = vld [vmem:[#allocation2 + $0x18] sm:$0xff]   ;;  %1924 = vmatmul.mubr.msk.bf16.gmra.mxu1 %vm1401_vm12, %v2066_v15 }
 0x113   : > { %1916 = vmatmul.mubr.msk.bf16.gmra.mxu0 %vm1401_vm12, %v2065_v20 }
 0x196   : > { %v1921_v56 = vpop.f32.mrf.mxu1 }
 0x197   : > { %v1913_v21 = vpop.f32.mrf.mxu0  ;;  %v1505_v16 = vadd.f32 %v1921_v56, %v1871_v4 }
 0x198   : > { %v1473_v18 = vadd.f32 %v1913_v21, %v1871_v4  ;;  %v1496_v57 = vpop.f32.mrf.mxu1 }
 0x199   : > { %v1537_v23 = vmax.f32 %v1505_v16, 0.0  ;;  %v1464_v22 = vpop.f32.mrf.mxu0  ;;  %v1497_v24 = vadd.f32 %v1871_v4, %v1496_v57 }
 0x19a   : > { %v1529_v8 = vmax.f32 %v1473_v18, 0.0  ;;  %v1465_v26 = vadd.f32 %v1871_v4, %v1464_v22  ;;  %v1922_v27 = vpop.f32.mrf.mxu1 }
 0x19b   : > { %1554 = vst.msk [vmem:[%s2694_s28 + $0x50] sm:$0xff] %vm1126_vm4, %v1537_v23  ;;  %v1535_v30 = vmax.f32 %v1497_v24, 0.0  ;;  %v1914_v32 = vpop.f32.mrf.mxu0  ;;  %v1508_v10 = vadd.f32 %v1922_v27, %v1871_v4 }
 0x19c   : > { %1546 = vst.msk [vmem:[%s2694_s28 + $0x10] sm:$0xff] %vm1126_vm4, %v1529_v8  ;;  %v1527_v2 = vmax.f32 %v1465_v26, 0.0  ;;  %v1476_v28 = vadd.f32 %v1914_v32, %v1871_v4  ;;  %v1499_v36 = vpop.f32.mrf.mxu1 }
 0x19d   : > { %1552 = vst.msk [vmem:[%s2694_s28 + $0x40] sm:$0xff] %vm1126_vm4, %v1535_v30  ;;  %v1538_v37 = vmax.f32 %v1508_v10, 0.0  ;;  %v1467_v5 = vpop.f32.mrf.mxu0  ;;  %v1500_v35 = vadd.f32 %v1871_v4, %v1499_v36 }
 0x19e   : > { %1544 = vst.msk [vmem:[%s2694_s28] sm:$0xff] %vm1126_vm4, %v1527_v2  ;;  %v1530_v33 = vmax.f32 %v1476_v28, 0.0  ;;  %v1468_v31 = vadd.f32 %v1871_v4, %v1467_v5 }
 0x19f   : > { %1555 = vst.msk [vmem:[%s2694_s28 + $0x58] sm:$0xff] %vm1126_vm4, %v1538_v37  ;;  %v1536_v17 = vmax.f32 %v1500_v35, 0.0 }
 0x1a0   : > { %1547 = vst.msk [vmem:[%s2694_s28 + $0x18] sm:$0xff] %vm1126_vm4, %v1530_v33  ;;  %v1528_v50 = vmax.f32 %v1468_v31, 0.0 }
 0x1a1   : > { %1553 = vst.msk [vmem:[%s2694_s28 + $0x48] sm:$0xff] %vm1126_vm4, %v1536_v17 }
 0x1a2   : > { %1545 = vst.msk [vmem:[%s2694_s28 + $0x8] sm:$0xff] %vm1126_vm4, %v1528_v50 }
 0x1d2   : > { %v1925_v53 = vpop.f32.mrf.mxu1 }
 0x1d3   : > { %v1917_v41 = vpop.f32.mrf.mxu0  ;;  %v1521_v19 = vadd.f32 %v1925_v53, %v1871_v4 }
 0x1d4   : > { %v1489_v42 = vadd.f32 %v1917_v41, %v1871_v4  ;;  %v1512_v38 = vpop.f32.mrf.mxu1 }
 0x1d5   : > { %v1541_v13 = vmax.f32 %v1521_v19, 0.0  ;;  %v1480_v43 = vpop.f32.mrf.mxu0  ;;  %v1513_v44 = vadd.f32 %v1871_v4, %v1512_v38 }
 0x1d6   : > { %v1533_v25 = vmax.f32 %v1489_v42, 0.0  ;;  %v1481_v29 = vadd.f32 %v1871_v4, %v1480_v43  ;;  %v1926_v46 = vpop.f32.mrf.mxu1 }
 0x1d7   : > { %1558 = vst.msk [vmem:[%s2694_s28 + $0x70] sm:$0xff] %vm1126_vm4, %v1541_v13  ;;  %v1539_v47 = vmax.f32 %v1513_v44, 0.0  ;;  %v1918_v48 = vpop.f32.mrf.mxu0  ;;  %v1524_v45 = vadd.f32 %v1926_v46, %v1871_v4 }
 0x1d8   : > { %1550 = vst.msk [vmem:[%s2694_s28 + $0x30] sm:$0xff] %vm1126_vm4, %v1533_v25  ;;  %v1531_v49 = vmax.f32 %v1481_v29, 0.0  ;;  %v1492_v51 = vadd.f32 %v1918_v48, %v1871_v4  ;;  %v1515_v52 = vpop.f32.mrf.mxu1 }
 0x1d9   : > { %1556 = vst.msk [vmem:[%s2694_s28 + $0x60] sm:$0xff] %vm1126_vm4, %v1539_v47  ;;  %v1542_v1 = vmax.f32 %v1524_v45, 0.0  ;;  %v1483_v11 = vpop.f32.mrf.mxu0  ;;  %v1516_v54 = vadd.f32 %v1871_v4, %v1515_v52 }
 0x1da   : > { %1548 = vst.msk [vmem:[%s2694_s28 + $0x20] sm:$0xff] %vm1126_vm4, %v1531_v49  ;;  %v1534_v34 = vmax.f32 %v1492_v51, 0.0  ;;  %v1484_v55 = vadd.f32 %v1871_v4, %v1483_v11 }
 0x1db   : > { %1559 = vst.msk [vmem:[%s2694_s28 + $0x78] sm:$0xff] %vm1126_vm4, %v1542_v1  ;;  %v1540_v58 = vmax.f32 %v1516_v54, 0.0 }
 0x1dc   : > { %1551 = vst.msk [vmem:[%s2694_s28 + $0x38] sm:$0xff] %vm1126_vm4, %v1534_v34  ;;  %v1532_v59 = vmax.f32 %v1484_v55, 0.0 }
 0x1dd   : > { %1557 = vst.msk [vmem:[%s2694_s28 + $0x68] sm:$0xff] %vm1126_vm4, %v1540_v58 }
 0x1de   : > { %1549 = vst.msk [vmem:[%s2694_s28 + $0x28] sm:$0xff] %vm1126_vm4, %v1532_v59 }
 0x1df PF: > { %s13_s16 = sadd.s32 1, %s2105_s16   ;;  %s2747_s12 = smov %s2097_s14 }
 0x1e0   : > { %p10_p7 = scmp.ge.s32.totalorder %s13_s16, 6   ;;  %s2748_s13 = smov %s2101_s15 }
 0x1e1   : > { %s2749_s14 = smov %s2752_s17  ;;  %s2750_s15 = smov %s2756_s18 }
 0x1e2   :  { %12 = sbr.rel (!%p10_p7) target bundleno = 3 (0x3), region = 75 }

</bundles_post_ra>
